<compile_context>
chip_gen: v5e
topology: v5e:2x2
jax: 0.10.0
libtpu: 0.0.40
codegen_flags: <defaults>
</compile_context>

<pallas_src>
import jax
import jax.numpy as jnp
from jax.experimental import pallas as pl
from jax.experimental.pallas import tpu as pltpu


def _round_up(a, b):
    return ((a + b - 1) // b) * b


def _ffn_kernel(x_ref, w1_ref, b1_ref, w2_ref, b2_ref, o_ref, acc_ref):
    # x_ref:  [tr, D]      (resident across the k axis)
    # w1_ref: [D, tH]      (slice k of W1^T)
    # b1_ref: [1, tH]
    # w2_ref: [tH, D]      (slice k of W2^T)
    # b2_ref: [1, D]
    # o_ref:  [tr, D]      (written only at the last k step)
    # acc_ref:[tr, D] f32  VMEM accumulator
    k = pl.program_id(1)

    @pl.when(k == 0)
    def _():
        acc_ref[...] = jnp.zeros_like(acc_ref)

    # matmul1 for this hidden slice + bias + ReLU (f32 accumulation on MXU).
    h = jnp.dot(x_ref[...], w1_ref[...], preferred_element_type=jnp.float32)
    h = jnp.maximum(h + b1_ref[...].astype(jnp.float32), 0.0)

    # matmul2 partial product, accumulated into the f32 scratch.
    acc_ref[...] += jnp.dot(h.astype(w2_ref.dtype), w2_ref[...],
                            preferred_element_type=jnp.float32)

    @pl.when(k == pl.num_programs(1) - 1)
    def _():
        out = acc_ref[...] + b2_ref[...].astype(jnp.float32)
        o_ref[...] = out.astype(o_ref.dtype)


def prepare_ffn_params(w1, b1, w2, b2, *, tile_h=512):
    """One-time parameter layout prep (do NOT call per forward).

    w1: [H, D], b1: [H]   (PyTorch nn.Linear(model_dim, hidden_dim) layout)
    w2: [D, H], b2: [D]   (PyTorch nn.Linear(hidden_dim, model_dim) layout)
    Returns dict with pre-transposed (and H-padded, if needed) weights.
    """
    H, D = w1.shape
    if H <= tile_h:
        th = H              # single hidden slice; block equals full dim
        h_p = H
    else:
        th = tile_h         # must be a multiple of 128 for lane alignment
        h_p = _round_up(H, th)

    w1_t = jnp.transpose(w1)        # [D, H]
    w2_t = jnp.transpose(w2)        # [H, D]
    b1_r = b1
    if h_p != H:
        # Zero padding is exact: relu(0 + 0) = 0 contributes nothing to matmul2.
        w1_t = jnp.pad(w1_t, ((0, 0), (0, h_p - H)))
        w2_t = jnp.pad(w2_t, ((0, h_p - H), (0, 0)))
        b1_r = jnp.pad(b1, (0, h_p - H))

    return dict(
        w1_t=w1_t,                       # [D, Hp]
        b1=b1_r.reshape(1, h_p),         # [1, Hp]
        w2_t=w2_t,                       # [Hp, D]
        b2=b2.reshape(1, D),             # [1, D]
        tile_h=th,
        model_dim=D,
        hidden_dim_padded=h_p,
    )


def feedforward(x, params, *, tile_r=256):
    """Feedforward forward pass. x: [B, S, D] -> [B, S, D]."""
    B, S, D = x.shape
    assert D == params["model_dim"]
    w1_t, b1_2 = params["w1_t"], params["b1"]
    w2_t, b2_2 = params["w2_t"], params["b2"]
    th = params["tile_h"]
    h_p = params["hidden_dim_padded"]

    rows = B * S
    x2 = x.reshape(rows, D)

    # Row tile: multiple of 8 sublanes; pad rows only when unavoidable.
    tr = min(tile_r, _round_up(rows, 8))
    rows_p = _round_up(rows, tr)
    if rows_p != rows:
        x2 = jnp.pad(x2, ((0, rows_p - rows), (0, 0)))

    n_i = rows_p // tr
    n_k = h_p // th
    grid = (n_i, n_k)

    xi = jnp.dtype(x.dtype).itemsize
    w1i = jnp.dtype(w1_t.dtype).itemsize
    w2i = jnp.dtype(w2_t.dtype).itemsize

    # Advisory cost estimate (per-operand itemsizes; weights re-fetched per row tile).
    cost = pl.CostEstimate(
        flops=4 * rows_p * D * h_p + 2 * rows_p * (D + h_p),
        transcendentals=0,
        bytes_accessed=(rows_p * D * xi                       # x read
                        + rows_p * D * xi                     # out write
                        + n_i * D * h_p * w1i                 # W1^T streamed
                        + n_i * h_p * D * w2i                 # W2^T streamed
                        + n_i * (h_p * w1i + D * w2i)),       # biases
    )

    # VMEM budget: double-buffered pipeline blocks + f32 accumulator + headroom.
    vmem_needed = (2 * tr * D * xi            # x tile
                   + 2 * D * th * w1i         # W1^T slice
                   + 2 * th * w1i             # b1 slice
                   + 2 * th * D * w2i         # W2^T slice
                   + 2 * D * w2i              # b2
                   + 2 * tr * D * xi          # out tile
                   + tr * D * 4)              # f32 accumulator scratch
    vmem_limit = int(min(max(vmem_needed + 16 * 2**20, 32 * 2**20), 112 * 2**20))

    out = pl.pallas_call(
        _ffn_kernel,
        out_shape=jax.ShapeDtypeStruct((rows_p, D), x.dtype),
        grid_spec=pltpu.PrefetchScalarGridSpec(
            num_scalar_prefetch=0,
            grid=grid,
            in_specs=[
                pl.BlockSpec((tr, D), lambda i, k: (i, 0)),    # x tile (resident over k)
                pl.BlockSpec((D, th), lambda i, k: (0, k)),    # W1^T slice (streamed)
                pl.BlockSpec((1, th), lambda i, k: (0, k)),    # b1 slice
                pl.BlockSpec((th, D), lambda i, k: (k, 0)),    # W2^T slice (streamed)
                pl.BlockSpec((1, D), lambda i, k: (0, 0)),     # b2
            ],
            out_specs=pl.BlockSpec((tr, D), lambda i, k: (i, 0)),
            scratch_shapes=[pltpu.VMEM((tr, D), jnp.float32)],
        ),
        compiler_params=pltpu.CompilerParams(
            dimension_semantics=("parallel", "arbitrary"),
            vmem_limit_bytes=vmem_limit,
        ),
        cost_estimate=cost,
    )(x2, w1_t, b1_2, w2_t, b2_2)

    if rows_p != rows:
        out = out[:rows]
    return out.reshape(B, S, D)


def _reference(x, w1, b1, w2, b2):
    # dropout is identity in eval mode
    h = jnp.maximum(jnp.dot(x, w1.T) + b1, 0.0)
    return jnp.dot(h, w2.T) + b2


if __name__ == "__main__":
    B, S, D, H = 2, 8, 32, 64  # batch, seq, model_dim, hidden_dim

    key = jax.random.PRNGKey(0)
    kx, kw1, kb1, kw2, kb2 = jax.random.split(key, 5)
    x = jax.random.normal(kx, (B, S, D), dtype=jnp.float32)
    # PyTorch nn.Linear layout: [out_features, in_features].
    w1 = jax.random.normal(kw1, (H, D), dtype=jnp.float32) * 0.1
    b1 = jax.random.normal(kb1, (H,), dtype=jnp.float32) * 0.1
    w2 = jax.random.normal(kw2, (D, H), dtype=jnp.float32) * 0.1
    b2 = jax.random.normal(kb2, (D,), dtype=jnp.float32) * 0.1

    # One-time parameter prep (transpose / pad / reshape hoisted out of forward).
    params = prepare_ffn_params(w1, b1, w2, b2)

    out = feedforward(x, params)
    out = jax.block_until_ready(out)

    ref = _reference(x, w1, b1, w2, b2)
    assert out.shape == (B, S, D)
    assert jnp.allclose(out, ref, atol=1e-3, rtol=1e-3), "mismatch vs reference"

    print("KERNEL_OK")
</pallas_src>

<mosaic_0001>
module attributes {stable_mosaic.version = 11 : i64} {
  func.func @_ffn_kernel(%arg0: i32, %arg1: i32, %arg2: memref<16x32xf32, #tpu.memory_space<vmem>>, %arg3: memref<32x64xf32, #tpu.memory_space<vmem>>, %arg4: memref<1x64xf32, #tpu.memory_space<vmem>>, %arg5: memref<64x32xf32, #tpu.memory_space<vmem>>, %arg6: memref<1x32xf32, #tpu.memory_space<vmem>>, %arg7: memref<16x32xf32, #tpu.memory_space<vmem>>, %arg8: memref<16x32xf32, #tpu.memory_space<vmem>>) attributes {dimension_semantics = [#tpu.dimension_semantics<parallel>, #tpu.dimension_semantics<arbitrary>], iteration_bounds = array<i64: 1, 1>, scalar_prefetch = 0 : i64, scratch_operands = 1 : i64, tpu.core_type = #tpu.core_type<tc>, window_params = [{transform_indices = @transform_0, window_bounds = array<i64: 16, 32>}, {transform_indices = @transform_1, window_bounds = array<i64: 32, 64>}, {transform_indices = @transform_2, window_bounds = array<i64: 1, 64>}, {transform_indices = @transform_3, window_bounds = array<i64: 64, 32>}, {pipeline_mode = #tpu.pipeline_mode<synchronous>, transform_indices = @transform_4, window_bounds = array<i64: 1, 32>}, {transform_indices = @transform_5, window_bounds = array<i64: 16, 32>}]} {
    %c0_i32 = arith.constant 0 : i32
    %0 = arith.cmpi eq, %arg1, %c0_i32 : i32
    %1 = arith.extui %0 : i1 to i32
    %c0_i32_0 = arith.constant 0 : i32
    %2 = arith.cmpi ne, %1, %c0_i32_0 : i32
    scf.if %2 {
      %cst_16 = arith.constant 0.000000e+00 : f32
      %19 = vector.broadcast %cst_16 : f32 to vector<16x32xf32>
      %c0_17 = arith.constant 0 : index
      %c0_18 = arith.constant 0 : index
      %20 = vector.load %arg8[%c0_17, %c0_18] : memref<16x32xf32, #tpu.memory_space<vmem>>, vector<16x32xf32>
      tpu.vector_store %arg8[%c0_17, %c0_18], %19 {strides = array<i32>} : memref<16x32xf32, #tpu.memory_space<vmem>>, vector<16x32xf32>,
    } else {
    }
    %c0 = arith.constant 0 : index
    %c0_1 = arith.constant 0 : index
    %3 = vector.load %arg2[%c0, %c0_1] : memref<16x32xf32, #tpu.memory_space<vmem>>, vector<16x32xf32>
    %c0_2 = arith.constant 0 : index
    %c0_3 = arith.constant 0 : index
    %4 = vector.load %arg3[%c0_2, %c0_3] : memref<32x64xf32, #tpu.memory_space<vmem>>, vector<32x64xf32>
    %cst = arith.constant dense<0.000000e+00> : vector<16x64xf32>
    %5 = tpu.matmul %3, %4, %cst {dimension_numbers = #tpu.dot_dimension_numbers<[1], [0], [0], [1], [0, 0, 1, 1], [], []>} : vector<16x32xf32>, vector<32x64xf32>, vector<16x64xf32> -> vector<16x64xf32>
    %c0_4 = arith.constant 0 : index
    %c0_5 = arith.constant 0 : index
    %6 = vector.load %arg4[%c0_4, %c0_5] : memref<1x64xf32, #tpu.memory_space<vmem>>, vector<1x64xf32>
    %7 = vector.broadcast %6 : vector<1x64xf32> to vector<16x64xf32>
    %8 = arith.addf %5, %7 : vector<16x64xf32>
    %cst_6 = arith.constant 0.000000e+00 : f32
    %9 = vector.broadcast %cst_6 : f32 to vector<16x64xf32>
    %10 = arith.maximumf %8, %9 : vector<16x64xf32>
    %c0_7 = arith.constant 0 : index
    %c0_8 = arith.constant 0 : index
    %11 = vector.load %arg8[%c0_7, %c0_8] : memref<16x32xf32, #tpu.memory_space<vmem>>, vector<16x32xf32>
    %c0_9 = arith.constant 0 : index
    %c0_10 = arith.constant 0 : index
    %12 = vector.load %arg5[%c0_9, %c0_10] : memref<64x32xf32, #tpu.memory_space<vmem>>, vector<64x32xf32>
    %cst_11 = arith.constant dense<0.000000e+00> : vector<16x32xf32>
    %13 = tpu.matmul %10, %12, %cst_11 {dimension_numbers = #tpu.dot_dimension_numbers<[1], [0], [0], [1], [0, 0, 1, 1], [], []>} : vector<16x64xf32>, vector<64x32xf32>, vector<16x32xf32> -> vector<16x32xf32>
    %14 = arith.addf %11, %13 : vector<16x32xf32>
    %c0_12 = arith.constant 0 : index
    %c0_13 = arith.constant 0 : index
    %15 = vector.load %arg8[%c0_12, %c0_13] : memref<16x32xf32, #tpu.memory_space<vmem>>, vector<16x32xf32>
    tpu.vector_store %arg8[%c0_12, %c0_13], %14 {strides = array<i32>} : memref<16x32xf32, #tpu.memory_space<vmem>>, vector<16x32xf32>,
    %c0_i32_14 = arith.constant 0 : i32
    %16 = arith.cmpi eq, %arg1, %c0_i32_14 : i32
    %17 = arith.extui %16 : i1 to i32
    %c0_i32_15 = arith.constant 0 : i32
    %18 = arith.cmpi ne, %17, %c0_i32_15 : i32
    scf.if %18 {
      %c0_16 = arith.constant 0 : index
      %c0_17 = arith.constant 0 : index
      %19 = vector.load %arg8[%c0_16, %c0_17] : memref<16x32xf32, #tpu.memory_space<vmem>>, vector<16x32xf32>
      %c0_18 = arith.constant 0 : index
      %c0_19 = arith.constant 0 : index
      %20 = vector.load %arg6[%c0_18, %c0_19] : memref<1x32xf32, #tpu.memory_space<vmem>>, vector<1x32xf32>
      %21 = vector.broadcast %20 : vector<1x32xf32> to vector<16x32xf32>
      %22 = arith.addf %19, %21 : vector<16x32xf32>
      %c0_20 = arith.constant 0 : index
      %c0_21 = arith.constant 0 : index
      %23 = vector.load %arg7[%c0_20, %c0_21] : memref<16x32xf32, #tpu.memory_space<vmem>>, vector<16x32xf32>
      tpu.vector_store %arg7[%c0_20, %c0_21], %22 {strides = array<i32>} : memref<16x32xf32, #tpu.memory_space<vmem>>, vector<16x32xf32>,
    } else {
    }
    return
  }
  func.func @transform_0(%arg0: i32, %arg1: i32) -> (i32, i32) {
    %c0_i32 = arith.constant 0 : i32
    %c0_i32_0 = arith.constant 0 : i32
    return %arg0, %c0_i32 : i32, i32
  }
  func.func @transform_1(%arg0: i32, %arg1: i32) -> (i32, i32) {
    %c0_i32 = arith.constant 0 : i32
    %c0_i32_0 = arith.constant 0 : i32
    return %c0_i32, %arg1 : i32, i32
  }
  func.func @transform_2(%arg0: i32, %arg1: i32) -> (i32, i32) {
    %c0_i32 = arith.constant 0 : i32
    %c0_i32_0 = arith.constant 0 : i32
    return %c0_i32, %arg1 : i32, i32
  }
  func.func @transform_3(%arg0: i32, %arg1: i32) -> (i32, i32) {
    %c0_i32 = arith.constant 0 : i32
    %c0_i32_0 = arith.constant 0 : i32
    return %arg1, %c0_i32 : i32, i32
  }
  func.func @transform_4(%arg0: i32, %arg1: i32) -> (i32, i32) {
    %c0_i32 = arith.constant 0 : i32
    %c0_i32_0 = arith.constant 0 : i32
    %c0_i32_1 = arith.constant 0 : i32
    return %c0_i32, %c0_i32_0 : i32, i32
  }
  func.func @transform_5(%arg0: i32, %arg1: i32) -> (i32, i32) {
    %c0_i32 = arith.constant 0 : i32
    %c0_i32_0 = arith.constant 0 : i32
    return %arg0, %c0_i32 : i32, i32
  }
}

</mosaic_0001>

<bundles_post_ra>
// kernel: tpu_custom_call.1
= control target key start
LH: loop header
LB: loop body
LE: loop exit
PB: predicated region body
PF: predicated region fallthrough
CT: control target
= control target key end

     0   :  { %s286_s0 = inlined_call_operand.vmem [shape: f32[16,32], index: 0, kind: input, shape index: {}]   ;;  %s287_s1 = inlined_call_operand.vmem [shape: f32[32,64], index: 1, kind: input, shape index: {}]   ;;  %s288_s2 = inlined_call_operand.vmem [shape: f32[1,64], index: 2, kind: input, shape index: {}]   ;;  %s289_s3 = inlined_call_operand.vmem [shape: f32[64,32], index: 3, kind: input, shape index: {}]   ;;  %s290_s4 = inlined_call_operand.vmem [shape: f32[1,32], index: 4, kind: input, shape index: {}]   ;;  %s291_s5 = inlined_call_operand.hbm [shape: f32[16,32], index: 5, kind: output, shape index: {}]  }
   0x1   :  { %v33_v0 = vld [vmem:[%s287_s1 + $0x18] sm:$0xff]  ;;  %v32_v1 = vld [vmem:[%s287_s1 + $0x10] sm:$0xff]  ;;  %v31_v2 = vld [vmem:[%s287_s1 + $0x8] sm:$0xff] }
   0x2   :  { %149 = vmatpush.msra.mxu3 %v33_v0  ;;  %57 = vmatpush.msra.mxu0 %v33_v0  ;;  %v79_v3 = vld [vmem:[%s289_s3 + $0x38] sm:$0xff]  ;;  %v78_v4 = vld [vmem:[%s289_s3 + $0x30] sm:$0xff]  ;;  %v30_v5 = vld [vmem:[%s287_s1] sm:$0xff] }
   0x3   :  { %153 = vmatpush.msra.mxu2 %v79_v3  ;;  %95 = vmatpush.msra.mxu1 %v79_v3 }
   0x4   :  { %150 = vmatpush.msra.mxu3 %v32_v1  ;;  %58 = vmatpush.msra.mxu0 %v32_v1 }
   0x5   :  { %10 = vsyncpa [#allocation4], 0  ;;  %vm25_vm0 = vcmask 261120   ;;  %v29_v6 = vld [vmem:[%s286_s0 + $0x8] sm:$0xff]  ;;  %v28_v7 = vld [vmem:[%s286_s0] sm:$0xff]  ;;  %154 = vmatpush.msra.mxu2 %v78_v4  ;;  %96 = vmatpush.msra.mxu1 %v78_v4  ;;  %v193_v14 = vmov 0.0  }
   0x6   :  { %151 = vmatpush.msra.mxu3 %v31_v2  ;;  %59 = vmatpush.msra.mxu0 %v31_v2  ;;  %v77_v8 = vld [vmem:[%s289_s3 + $0x28] sm:$0xff]  ;;  %v76_v9 = vld [vmem:[%s289_s3 + $0x20] sm:$0xff]  ;;  %v75_v10 = vld [vmem:[%s289_s3 + $0x18] sm:$0xff]  ;;  %26 = vst.msk [vmem:[#allocation2] sm:$0xff] %vm25_vm0, %v193_v14  ;;  %vm80_vm1 = vcmask 523264   ;;  %s133_s25 = sshll.u32 %s291_s5, 4  ;;  %s134_s25 = int_to_ptr.hbm [resolvable:$true] %s133_s25 }
   0x7   :  { %155 = vmatpush.msra.mxu2 %v77_v8  ;;  %97 = vmatpush.msra.mxu1 %v77_v8  ;;  %v74_v11 = vld [vmem:[%s289_s3 + $0x10] sm:$0xff]  ;;  %v73_v12 = vld [vmem:[%s289_s3 + $0x8] sm:$0xff]  ;;  %v72_v13 = vld [vmem:[%s289_s3] sm:$0xff]  ;;  %27 = vst.msk [vmem:[#allocation2 + $0x8] sm:$0xff] %vm25_vm0, %v193_v14  ;;  %s196_s26 = smov 8  }
   0x8   :  { %152 = vmatpush.msra.mxu3 %v30_v5  ;;  %60 = vmatpush.msra.mxu0 %v30_v5  ;;  %v165_v15 = vld [vmem:[%s288_s2] ss:$0 sm:$0xff]  ;;  %s194_s2 = smov [#allocation3]  }
   0x9   :  { %146 = vmatmul.msk.f32.vlgmr.msra.gmra.mxu3 %vm25_vm0, %v29_v6  ;;  %145 = vmatmul.msk.f32.vlgmr.msra.gmra.mxu0 %vm25_vm0, %v28_v7  ;;  %v166_v25 = vld [vmem:[%s290_s4] ss:$0 sm:$0xff]  ;;  %s131_s22 = sshll.u32 %s194_s2, 4  ;;  %s195_s4 = smov 128   ;;  %s132_s22 = int_to_ptr.vmem [resolvable:$true] %s131_s22 }
   0xa   :  { %156 = vmatpush.msra.mxu2 %v76_v9  ;;  %98 = vmatpush.msra.mxu1 %v76_v9 }
   0xc   :  { %157 = vmatpush.msra.mxu2 %v75_v10  ;;  %99 = vmatpush.msra.mxu1 %v75_v10 }
   0xd   :  { %v70_v22 = vld [vmem:[#allocation2] sm:$0xff] }
   0xe   :  { %158 = vmatpush.msra.mxu2 %v74_v11  ;;  %100 = vmatpush.msra.mxu1 %v74_v11  ;;  %v71_v26 = vld [vmem:[#allocation2 + $0x8] sm:$0xff] }
  0x10   :  { %159 = vmatpush.msra.mxu2 %v73_v12  ;;  %101 = vmatpush.msra.mxu1 %v73_v12 }
  0x12   :  { %160 = vmatpush.msra.mxu2 %v72_v13  ;;  %102 = vmatpush.msra.mxu1 %v72_v13 }
  0x86   :  { %v62_v16 = vpop.f32.mrf.mxu0 }
  0x87   :  { %v63_v17 = vadd.f32 %v165_v15, %v62_v16 }
  0x89   :  { %v68_v18 = vmax.f32 %v63_v17, 0.0 }
  0x8b   :  { %147 = vmatmul.msk.f32.vlgmr.msra.gmra.mxu1 %vm80_vm1, %v68_v18 }
  0x8c   :  { %v65_v19 = vpop.f32.mrf.mxu3 }
  0x8d   :  { %v66_v20 = vadd.f32 %v165_v15, %v65_v19 }
  0x8f   :  { %v69_v21 = vmax.f32 %v66_v20, 0.0 }
  0x91   :  { %148 = vmatmul.msk.f32.vlgmr.msra.gmra.mxu2 %vm80_vm1, %v69_v21 }
 0x108   :  { %v104_v23 = vpop.f32.mrf.mxu1 }
 0x109   :  { %v110_v24 = vadd.f32 %v104_v23, %v70_v22 }
 0x10b   :  { %112 = vst.msk [vmem:[#allocation2] sm:$0xff] %vm25_vm0, %v110_v24 }
 0x112   :  { %v117_v27 = vld [vmem:[#allocation2] sm:$0xff] }
 0x113   :  { %v123_v28 = vadd.f32 %v166_v25, %v117_v27 }
 0x114   :  { %v107_v29 = vpop.f32.mrf.mxu2 }
 0x115   :  { %v111_v30 = vadd.f32 %v107_v29, %v71_v26  ;;  %125 = vst.msk [vmem:[#allocation3] sm:$0xff] %vm25_vm0, %v123_v28 }
 0x117   :  { %113 = vst.msk [vmem:[#allocation2 + $0x8] sm:$0xff] %vm25_vm0, %v111_v30 }
 0x11e   :  { %v118_v31 = vld [vmem:[#allocation2 + $0x8] sm:$0xff] }
 0x11f   :  { %v124_v32 = vadd.f32 %v166_v25, %v118_v31 }
 0x121   :  { %126 = vst.msk [vmem:[#allocation3 + $0x8] sm:$0xff] %vm25_vm0, %v124_v32 }
 0x122   :  { %139 = dma.vmem_to_hbm [thread:$0]  %s132_s22, 256, %s134_s25, [#allocation4], %s195_s4, %s195_s4, %s196_s26  }
 0x123   :  { %191 = dma.done.wait [#allocation4], 256  }
 0x124   :  { %192 = vsyncadd [#allocation4], 4294967040 }
 0x125   :  { %144 = vsyncpa [#allocation4], 1 }

</bundles_post_ra>
